<compile_context>
chip_gen: v5e
topology: v5e:2x2
jax: 0.10.0
libtpu: 0.0.40
codegen_flags: <defaults>
</compile_context>

<pallas_src>
import functools
import warnings

import jax
import jax.numpy as jnp
from jax.experimental import pallas as pl
from jax.experimental.pallas import tpu as pltpu

_LANE = 128      # vreg lane width / MXU alignment
_SUBLANE = 8     # f32 sublane height


def _round_up(n, m):
    return ((n + m - 1) // m) * m


def _cdiv(a, b):
    return -(-a // b)


# --------------------------------------------------------------------------
# Hardware queries (cached)
# --------------------------------------------------------------------------
@functools.lru_cache(maxsize=None)
def _vmem_capacity_bytes():
    try:
        return int(pltpu.get_tpu_info().vmem_capacity_bytes)
    except Exception:
        return 64 << 20   # conservative fallback (v7x per-TensorCore VMEM)


@functools.lru_cache(maxsize=None)
def _num_tensorcores():
    """TensorCores a 'parallel' grid axis is sharded across (per chip)."""
    try:
        kind = jax.devices()[0].device_kind.lower()
    except Exception:
        return 1
    for tag in ("v4", "v5p", "7x", "v7"):
        if tag in kind:
            return 2
    return 1            # v5e / v6e: single TensorCore


_BUFFERED1 = None


def _single_buffer_supported():
    """Probe once whether pipeline_mode=pl.Buffered(1) lowers on this stack."""
    global _BUFFERED1
    if _BUFFERED1 is None:
        try:
            def k(x_ref, o_ref):
                o_ref[...] = x_ref[...]
            spec = pl.BlockSpec((_SUBLANE, _LANE), lambda i: (0, 0),
                                pipeline_mode=pl.Buffered(1))
            out = pl.pallas_call(
                k,
                out_shape=jax.ShapeDtypeStruct((_SUBLANE, _LANE), jnp.float32),
                grid=(1,),
                in_specs=[spec],
                out_specs=pl.BlockSpec((_SUBLANE, _LANE), lambda i: (0, 0)),
            )(jnp.zeros((_SUBLANE, _LANE), jnp.float32))
            jax.block_until_ready(out)
            _BUFFERED1 = True
        except Exception:
            _BUFFERED1 = False
            warnings.warn(
                "pl.Buffered(1) is not supported by this jax/libtpu; "
                "weight/bias blocks fall back to default double buffering "
                "(2x parameter VMEM).")
    return _BUFFERED1


# --------------------------------------------------------------------------
# Kernel body
# --------------------------------------------------------------------------
def _make_esm_kernel(num_layers, compute_dtype):
    """Fused MLP body: Linear -> ReLU -> ... -> Linear (no trailing ReLU)."""

    def kernel(x_ref, *refs):
        # refs = (w0, b0, w1, b1, ..., w_{L-1}, b_{L-1}, out_ref)
        out_ref = refs[-1]
        h = x_ref[...]
        for i in range(num_layers):
            w = refs[2 * i][...]                  # [in_pad, out_pad], compute_dtype
            b = refs[2 * i + 1][...]              # [1, out_pad], f32
            acc = jnp.dot(h.astype(compute_dtype), w,
                          preferred_element_type=jnp.float32) + b
            if i < num_layers - 1:                # ReLU only between layers
                acc = jnp.maximum(acc, 0.0)
            h = acc
        out_ref[...] = h.astype(out_ref.dtype)

    return kernel


# --------------------------------------------------------------------------
# Parameter preparation (pad + cast ONCE, outside the hot path)
# --------------------------------------------------------------------------
def prepare_esm_params(weights, biases, compute_dtype=jnp.bfloat16):
    """Pad every feature dim to a 128 multiple and cast weights to compute_dtype.

    weights[i]: [in_i, out_i]  (transposed vs torch's [out, in])
    biases[i]:  [1, out_i] or [out_i]
    """
    assert len(weights) == len(biases) and len(weights) >= 1
    compute_dtype = jnp.dtype(compute_dtype)
    dims = [int(weights[0].shape[0])] + [int(w.shape[1]) for w in weights]
    pdims = [_round_up(d, _LANE) for d in dims]

    wps, bps = [], []
    for i, (w, b) in enumerate(zip(weights, biases)):
        b = jnp.reshape(b, (1, -1))
        wp = jnp.zeros((pdims[i], pdims[i + 1]), compute_dtype)
        wp = wp.at[: w.shape[0], : w.shape[1]].set(w.astype(compute_dtype))
        bp = jnp.zeros((1, pdims[i + 1]), jnp.float32)
        bp = bp.at[:, : b.shape[1]].set(b.astype(jnp.float32))
        wps.append(wp)
        bps.append(bp)
    return dict(weights=tuple(wps), biases=tuple(bps),
                dims=tuple(dims), pdims=tuple(pdims),
                compute_dtype=compute_dtype)


# --------------------------------------------------------------------------
# Forward
# --------------------------------------------------------------------------
def esm_apply(x, params, *, tile_batch=None, out_dtype=None, x_pipeline_depth=None):
    """Apply a prepared ESM (prepare_esm_params) to x: [B, D_in]."""
    wps, bps = params["weights"], params["biases"]
    dims, pdims = params["dims"], params["pdims"]
    compute_dtype = params["compute_dtype"]
    num_layers = len(wps)

    B, d_in = x.shape
    assert d_in == dims[0], (d_in, dims[0])
    d_out = dims[-1]
    d_in_p, d_out_p = pdims[0], pdims[-1]
    out_dtype = jnp.dtype(out_dtype) if out_dtype is not None else x.dtype

    # Pre-cast x to bf16 in the wrapper -> halves per-step input DMA bytes.
    x_in_dtype = compute_dtype if compute_dtype == jnp.bfloat16 else x.dtype
    x_itemsize = jnp.dtype(x_in_dtype).itemsize
    out_itemsize = out_dtype.itemsize

    # ----- VMEM budget (generation aware) & tile selection -----
    single_buf = _single_buffer_supported()
    param_factor = 1 if single_buf else 2
    param_bytes = (sum(int(w.size) * w.dtype.itemsize for w in wps)
                   + sum(int(b.size) * b.dtype.itemsize for b in bps))
    resident = param_factor * param_bytes

    capacity = _vmem_capacity_bytes()
    budget = int(0.85 * capacity) - (2 << 20)     # headroom for Mosaic scratch
    # per batch-row cost: double-buffered x/out tiles + live f32 intermediates
    per_row = (2 * (d_in_p * x_itemsize + d_out_p * out_itemsize)
               + 3 * max(pdims) * 4)
    if resident + per_row * _SUBLANE > budget:
        # TODO(synk): add a layer-/K-tiled grid axis ("arbitrary") with a
        # pl.when-initialized f32 VMEM accumulator so parameters need not all
        # be resident (needed for large ESMs, especially on v7x's 64 MiB VMEM).
        raise ValueError(
            f"ESM parameters ({resident / 2**20:.1f} MiB resident) exceed the "
            f"VMEM budget ({budget / 2**20:.1f} MiB); layer-tiled fallback not "
            "implemented.")

    Bp8 = _round_up(B, _SUBLANE)
    if tile_batch is None:
        max_rows = min((budget - resident) // per_row, 1024)
        max_rows = max(_SUBLANE, (max_rows // _SUBLANE) * _SUBLANE)
        ncores = _num_tensorcores()
        if ncores <= 1:
            # Single TensorCore: the grid is a serial loop -> fewest, biggest steps.
            tile = min(max_rows, Bp8)
        else:
            per_core = _cdiv(Bp8, ncores)
            if per_core >= 2 * 256:
                # Both cores get work AND >=2 steps/core so tile DMA can pipeline.
                tile = _round_up(_cdiv(per_core, 2), _SUBLANE)
            else:
                # Small batch: one large MXU-friendly tile per core.
                tile = _round_up(per_core, _SUBLANE)
            tile = min(tile, max_rows)
        if tile >= 512:
            tile = (tile // 256) * 256            # keep M a multiple of 256
    else:
        tile = max(_SUBLANE, _round_up(int(tile_batch), _SUBLANE))
    tile = min(tile, Bp8)
    Bp = _round_up(B, tile)
    grid = (Bp // tile,)

    needed = (resident
              + 2 * tile * (d_in_p * x_itemsize + d_out_p * out_itemsize)
              + 3 * tile * max(pdims) * 4
              + (2 << 20))
    vmem_limit = int(min(max(needed, 32 << 20), int(0.85 * capacity)))

    # ----- pad (and maybe cast) x, per call -----
    x_p = jnp.zeros((Bp, d_in_p), x_in_dtype).at[:B, :d_in].set(
        x.astype(x_in_dtype))

    # ----- block specs -----
    param_kwargs = dict(pipeline_mode=pl.Buffered(1)) if single_buf else {}
    x_kwargs = {}
    if x_pipeline_depth is not None:
        # Only worth it when profiling shows exposed x-tile DMA (>=4 steps/core).
        x_kwargs = dict(pipeline_mode=pl.Buffered(int(x_pipeline_depth)))

    in_specs = [pl.BlockSpec((tile, d_in_p), lambda i: (i, 0), **x_kwargs)]
    for w, b in zip(wps, bps):
        in_specs.append(pl.BlockSpec(w.shape, lambda i: (0, 0), **param_kwargs))
        in_specs.append(pl.BlockSpec(b.shape, lambda i: (0, 0), **param_kwargs))
    out_spec = pl.BlockSpec((tile, d_out_p), lambda i: (i, 0))

    # Advisory cost estimate (weights read once: grid-invariant index maps).
    flops = 2 * Bp * sum(a * b for a, b in zip(pdims[:-1], pdims[1:]))
    bytes_accessed = (param_bytes
                      + int(x_p.size) * x_itemsize
                      + Bp * d_out_p * out_itemsize)
    cost = pl.CostEstimate(flops=flops, transcendentals=0,
                           bytes_accessed=bytes_accessed)

    out_p = pl.pallas_call(
        _make_esm_kernel(num_layers, compute_dtype),
        out_shape=jax.ShapeDtypeStruct((Bp, d_out_p), out_dtype),
        grid_spec=pltpu.PrefetchScalarGridSpec(
            num_scalar_prefetch=0,
            grid=grid,
            in_specs=in_specs,
            out_specs=out_spec,
        ),
        compiler_params=pltpu.CompilerParams(
            dimension_semantics=("parallel",),
            vmem_limit_bytes=vmem_limit,
        ),
        cost_estimate=cost,
    )(x_p, *[p for wb in zip(wps, bps) for p in wb])

    return out_p[:B, :d_out]


def esm_forward(x, weights, biases, *, compute_dtype=jnp.bfloat16,
                tile_batch=None, out_dtype=None):
    """Convenience wrapper: prepare params (pad + cast) and apply.

    For inference loops, call prepare_esm_params once and reuse with esm_apply.
    """
    params = prepare_esm_params(weights, biases, compute_dtype=compute_dtype)
    return esm_apply(x, params, tile_batch=tile_batch, out_dtype=out_dtype)


# --------------------------------------------------------------------------
# Synthetic init + pure-JAX reference
# --------------------------------------------------------------------------
def init_esm_params(key, embedding_dim, optional_layer_dims=None):
    """Deterministic synthetic init matching the shapes of ESM.__init__."""
    if optional_layer_dims is None:
        layer_dims = [embedding_dim, embedding_dim]
    else:
        if isinstance(optional_layer_dims, int):
            optional_layer_dims = [optional_layer_dims]
        layer_dims = [embedding_dim] + list(optional_layer_dims) + [embedding_dim]

    weights, biases = [], []
    for d_in, d_out in zip(layer_dims, layer_dims[1:]):
        key, kw, kb = jax.random.split(key, 3)
        bound = 1.0 / jnp.sqrt(d_in)
        # stored as [in, out] (transposed vs torch's [out, in])
        w = jax.random.uniform(kw, (d_in, d_out), jnp.float32, -bound, bound)
        b = jax.random.uniform(kb, (1, d_out), jnp.float32, -bound, bound)
        weights.append(w)
        biases.append(b)
    return weights, biases, layer_dims


def esm_reference(x, weights, biases):
    """Pure-JAX reference of the PyTorch forward pass."""
    h = x
    for i, (w, b) in enumerate(zip(weights, biases)):
        h = jnp.dot(h, w, precision=jax.lax.Precision.HIGHEST) + b
        if i < len(weights) - 1:
            h = jnp.maximum(h, 0.0)
    return h


if __name__ == "__main__":
    key = jax.random.PRNGKey(0)
    key, kx, kp = jax.random.split(key, 3)

    # Small config: batch=256, embedding_dim=256, one optional hidden layer of
    # 128 -> Linear(256,128) -> ReLU -> Linear(128,256).
    batch = 256
    embedding_dim = 256
    optional_layer_dims = [128]

    x = jax.random.normal(kx, (batch, embedding_dim), jnp.float32)
    weights, biases, layer_dims = init_esm_params(kp, embedding_dim,
                                                  optional_layer_dims)
    ref = esm_reference(x, weights, biases)

    # 1) Default path: bf16 MXU operands, f32 accumulation, params padded/cast
    #    once outside the call, auto (generation-aware) batch tile.
    params_bf16 = prepare_esm_params(weights, biases, compute_dtype=jnp.bfloat16)
    out_bf16 = jax.block_until_ready(esm_apply(x, params_bf16))
    assert out_bf16.shape == (batch, embedding_dim), out_bf16.shape
    assert jnp.allclose(out_bf16, ref, atol=1e-1, rtol=1e-1), \
        "bf16 path mismatch vs reference"

    # 2) f32-operand path for a tight numerics check.
    params_f32 = prepare_esm_params(weights, biases, compute_dtype=jnp.float32)
    out_f32 = jax.block_until_ready(esm_apply(x, params_f32))
    assert jnp.allclose(out_f32, ref, atol=1e-3, rtol=1e-3), \
        "f32 path mismatch vs reference"

    # 3) Non-lane-aligned / non-tile-aligned shapes exercise the padding path.
    key, kx2, kp2 = jax.random.split(key, 3)
    x2 = jax.random.normal(kx2, (20, 80), jnp.float32)
    w2, b2, _ = init_esm_params(kp2, 80, [40])
    out2 = jax.block_until_ready(
        esm_forward(x2, w2, b2, compute_dtype=jnp.float32))
    ref2 = esm_reference(x2, w2, b2)
    assert out2.shape == (20, 80), out2.shape
    assert jnp.allclose(out2, ref2, atol=1e-3, rtol=1e-3), "padded path mismatch"

    print("KERNEL_OK")
</pallas_src>

<mosaic_0001>
module attributes {stable_mosaic.version = 11 : i64} {
  func.func @k(%arg0: i32, %arg1: memref<8x128xf32, #tpu.memory_space<vmem>>, %arg2: memref<8x128xf32, #tpu.memory_space<vmem>>) attributes {dimension_semantics = [#tpu.dimension_semantics<arbitrary>], iteration_bounds = array<i64: 1>, scalar_prefetch = 0 : i64, scratch_operands = 0 : i64, tpu.core_type = #tpu.core_type<tc>, window_params = [{pipeline_mode = #tpu.pipeline_mode<synchronous>, transform_indices = @transform_0, window_bounds = array<i64: 8, 128>}, {pipeline_mode = #tpu.pipeline_mode<synchronous>, transform_indices = @transform_1, window_bounds = array<i64: 8, 128>}]} {
    %c0 = arith.constant 0 : index
    %c0_0 = arith.constant 0 : index
    %0 = vector.load %arg1[%c0, %c0_0] : memref<8x128xf32, #tpu.memory_space<vmem>>, vector<8x128xf32>
    %c0_1 = arith.constant 0 : index
    %c0_2 = arith.constant 0 : index
    %1 = vector.load %arg2[%c0_1, %c0_2] : memref<8x128xf32, #tpu.memory_space<vmem>>, vector<8x128xf32>
    tpu.vector_store %arg2[%c0_1, %c0_2], %0 {strides = array<i32>} : memref<8x128xf32, #tpu.memory_space<vmem>>, vector<8x128xf32>,
    return
  }
  func.func @transform_0(%arg0: i32) -> (i32, i32) {
    %c0_i32 = arith.constant 0 : i32
    %c0_i32_0 = arith.constant 0 : i32
    %c0_i32_1 = arith.constant 0 : i32
    return %c0_i32, %c0_i32_0 : i32, i32
  }
  func.func @transform_1(%arg0: i32) -> (i32, i32) {
    %c0_i32 = arith.constant 0 : i32
    %c0_i32_0 = arith.constant 0 : i32
    %c0_i32_1 = arith.constant 0 : i32
    return %c0_i32, %c0_i32_0 : i32, i32
  }
}

module attributes {stable_mosaic.version = 11 : i64} {
  func.func @kernel(%arg0: i32, %arg1: memref<256x256xbf16, #tpu.memory_space<vmem>>, %arg2: memref<256x128xbf16, #tpu.memory_space<vmem>>, %arg3: memref<1x128xf32, #tpu.memory_space<vmem>>, %arg4: memref<128x256xbf16, #tpu.memory_space<vmem>>, %arg5: memref<1x256xf32, #tpu.memory_space<vmem>>, %arg6: memref<256x256xf32, #tpu.memory_space<vmem>>) attributes {dimension_semantics = [#tpu.dimension_semantics<parallel>], iteration_bounds = array<i64: 1>, scalar_prefetch = 0 : i64, scratch_operands = 0 : i64, tpu.core_type = #tpu.core_type<tc>, window_params = [{transform_indices = @transform_0, window_bounds = array<i64: 256, 256>}, {pipeline_mode = #tpu.pipeline_mode<synchronous>, transform_indices = @transform_1, window_bounds = array<i64: 256, 128>}, {pipeline_mode = #tpu.pipeline_mode<synchronous>, transform_indices = @transform_2, window_bounds = array<i64: 1, 128>}, {pipeline_mode = #tpu.pipeline_mode<synchronous>, transform_indices = @transform_3, window_bounds = array<i64: 128, 256>}, {pipeline_mode = #tpu.pipeline_mode<synchronous>, transform_indices = @transform_4, window_bounds = array<i64: 1, 256>}, {transform_indices = @transform_5, window_bounds = array<i64: 256, 256>}]} {
    %c0 = arith.constant 0 : index
    %c0_0 = arith.constant 0 : index
    %0 = vector.load %arg1[%c0, %c0_0] : memref<256x256xbf16, #tpu.memory_space<vmem>>, vector<256x256xbf16>
    %c0_1 = arith.constant 0 : index
    %c0_2 = arith.constant 0 : index
    %1 = vector.load %arg2[%c0_1, %c0_2] : memref<256x128xbf16, #tpu.memory_space<vmem>>, vector<256x128xbf16>
    %c0_3 = arith.constant 0 : index
    %c0_4 = arith.constant 0 : index
    %2 = vector.load %arg3[%c0_3, %c0_4] : memref<1x128xf32, #tpu.memory_space<vmem>>, vector<1x128xf32>
    %cst = arith.constant dense<0.000000e+00> : vector<256x128xf32>
    %3 = tpu.matmul %0, %1, %cst {dimension_numbers = #tpu.dot_dimension_numbers<[1], [0], [0], [1], [0, 0, 1, 1], [], []>} : vector<256x256xbf16>, vector<256x128xbf16>, vector<256x128xf32> -> vector<256x128xf32>
    %4 = vector.broadcast %2 : vector<1x128xf32> to vector<256x128xf32>
    %5 = arith.addf %3, %4 : vector<256x128xf32>
    %cst_5 = arith.constant 0.000000e+00 : f32
    %6 = vector.broadcast %cst_5 : f32 to vector<256x128xf32>
    %7 = arith.maximumf %5, %6 : vector<256x128xf32>
    %c0_6 = arith.constant 0 : index
    %c0_7 = arith.constant 0 : index
    %8 = vector.load %arg4[%c0_6, %c0_7] : memref<128x256xbf16, #tpu.memory_space<vmem>>, vector<128x256xbf16>
    %c0_8 = arith.constant 0 : index
    %c0_9 = arith.constant 0 : index
    %9 = vector.load %arg5[%c0_8, %c0_9] : memref<1x256xf32, #tpu.memory_space<vmem>>, vector<1x256xf32>
    %10 = arith.truncf %7 : vector<256x128xf32> to vector<256x128xbf16>
    %cst_10 = arith.constant dense<0.000000e+00> : vector<256x256xf32>
    %11 = tpu.matmul %10, %8, %cst_10 {dimension_numbers = #tpu.dot_dimension_numbers<[1], [0], [0], [1], [0, 0, 1, 1], [], []>} : vector<256x128xbf16>, vector<128x256xbf16>, vector<256x256xf32> -> vector<256x256xf32>
    %12 = vector.broadcast %9 : vector<1x256xf32> to vector<256x256xf32>
    %13 = arith.addf %11, %12 : vector<256x256xf32>
    %c0_11 = arith.constant 0 : index
    %c0_12 = arith.constant 0 : index
    %14 = vector.load %arg6[%c0_11, %c0_12] : memref<256x256xf32, #tpu.memory_space<vmem>>, vector<256x256xf32>
    tpu.vector_store %arg6[%c0_11, %c0_12], %13 {strides = array<i32>} : memref<256x256xf32, #tpu.memory_space<vmem>>, vector<256x256xf32>,
    return
  }
  func.func @transform_0(%arg0: i32) -> (i32, i32) {
    %c0_i32 = arith.constant 0 : i32
    %c0_i32_0 = arith.constant 0 : i32
    return %arg0, %c0_i32 : i32, i32
  }
  func.func @transform_1(%arg0: i32) -> (i32, i32) {
    %c0_i32 = arith.constant 0 : i32
    %c0_i32_0 = arith.constant 0 : i32
    %c0_i32_1 = arith.constant 0 : i32
    return %c0_i32, %c0_i32_0 : i32, i32
  }
  func.func @transform_2(%arg0: i32) -> (i32, i32) {
    %c0_i32 = arith.constant 0 : i32
    %c0_i32_0 = arith.constant 0 : i32
    %c0_i32_1 = arith.constant 0 : i32
    return %c0_i32, %c0_i32_0 : i32, i32
  }
  func.func @transform_3(%arg0: i32) -> (i32, i32) {
    %c0_i32 = arith.constant 0 : i32
    %c0_i32_0 = arith.constant 0 : i32
    %c0_i32_1 = arith.constant 0 : i32
    return %c0_i32, %c0_i32_0 : i32, i32
  }
  func.func @transform_4(%arg0: i32) -> (i32, i32) {
    %c0_i32 = arith.constant 0 : i32
    %c0_i32_0 = arith.constant 0 : i32
    %c0_i32_1 = arith.constant 0 : i32
    return %c0_i32, %c0_i32_0 : i32, i32
  }
  func.func @transform_5(%arg0: i32) -> (i32, i32) {
    %c0_i32 = arith.constant 0 : i32
    %c0_i32_0 = arith.constant 0 : i32
    return %arg0, %c0_i32 : i32, i32
  }
}

</mosaic_0001>

<bundles_post_ra>
// kernel: tpu_custom_call.1
= control target key start
LH: loop header
LB: loop body
LE: loop exit
PB: predicated region body
PF: predicated region fallthrough
CT: control target
= control target key end

     0   :  { %6 = vsyncpa [#allocation3], 0  ;;  %s114_s0 = inlined_call_operand.hbm [shape: f32[8,128], index: 0, kind: input, shape index: {}]   ;;  %s115_s1 = inlined_call_operand.hbm [shape: f32[8,128], index: 1, kind: output, shape index: {}]  }
   0x1   :  { %7 = vsyncpa [#allocation4], 0  ;;  %s13_s8 = sshll.u32 %s114_s0, 4  ;;  %s96_s9 = smov [#allocation2]   ;;  %s14_s8 = int_to_ptr.hbm [resolvable:$true] %s13_s8 }
   0x2   :  { %s15_s10 = sshll.u32 %s96_s9, 4  ;;  %s16_s10 = int_to_ptr.vmem [resolvable:$true] %s15_s10 }
   0x3   :  { %18 = dma.hbm_to_vmem [thread:$0]  %s14_s8, 128, %s16_s10, [#allocation3]  }
   0x4   :  { %92 = dma.done.wait [#allocation3], 128  }
   0x5   :  { %93 = vsyncadd [#allocation3], 4294967168  ;;  %s97_s11 = smov [#allocation5]   ;;  %s32_s15 = sshll.u32 %s115_s1, 4  ;;  %v23_v0 = vld [vmem:[#allocation2] sm:$0xff]  ;;  %s33_s15 = int_to_ptr.hbm [resolvable:$true] %s32_s15 }
   0x6   :  { %s30_s12 = sshll.u32 %s97_s11, 4  ;;  %24 = vst [vmem:[#allocation5] sm:$0xff] %v23_v0  ;;  %s31_s12 = int_to_ptr.vmem [resolvable:$true] %s30_s12 }
   0x7   :  { %35 = dma.vmem_to_hbm [thread:$0]  %s31_s12, 128, %s33_s15, [#allocation4]  }
   0x8   :  { %94 = dma.done.wait [#allocation4], 128  }
   0x9   :  { %95 = vsyncadd [#allocation4], 4294967168 }
   0xa   :  { %40 = vsyncpa [#allocation3], 1 }
   0xb   :  { %41 = vsyncpa [#allocation4], 1 }

// kernel: tpu_custom_call.1
= control target key start
LH: loop header
LB: loop body
LE: loop exit
PB: predicated region body
PF: predicated region fallthrough
CT: control target
= control target key end

     0   :  { %10 = vsyncpa [#allocation3], 0  ;;  %s1575_s0 = inlined_call_operand.hbm [shape: bf16[256,256], index: 0, kind: input, shape index: {}]   ;;  %s1576_s1 = inlined_call_operand.hbm [shape: bf16[256,128], index: 1, kind: input, shape index: {}]   ;;  %s1577_s2 = inlined_call_operand.vmem [shape: f32[1,128], index: 2, kind: input, shape index: {}]   ;;  %s1578_s3 = inlined_call_operand.hbm [shape: bf16[128,256], index: 3, kind: input, shape index: {}]   ;;  %s1579_s4 = inlined_call_operand.vmem [shape: f32[1,256], index: 4, kind: input, shape index: {}]   ;;  %s1580_s5 = inlined_call_operand.hbm [shape: f32[256,256], index: 5, kind: output, shape index: {}]  }
   0x1   :  { %11 = vsyncpa [#allocation6], 0  ;;  %s30_s20 = sshll.u32 %s1576_s1, 4  ;;  %s31_s20 = int_to_ptr.hbm [resolvable:$true] %s30_s20 }
   0x2   :  { %12 = vsyncpa [#allocation4], 0  ;;  %s1415_s21 = smov [#allocation5]   ;;  %s17_s25 = sshll.u32 %s1575_s0, 4  ;;  %s18_s25 = int_to_ptr.hbm [resolvable:$true] %s17_s25 }
   0x3   :  { %s32_s22 = sshll.u32 %s1415_s21, 4  ;;  %s1416_s26 = smov 64   ;;  %s33_s22 = int_to_ptr.vmem [resolvable:$true] %s32_s22 }
   0x4   :  { %s1417_s27 = smov 4   ;;  %s1418_s28 = smov [#allocation2]  }
   0x5   :  { %38 = dma.hbm_to_vmem [thread:$0]  %s31_s20, 2048, %s33_s22, [#allocation6], %s1416_s26, %s1416_s26, %s1417_s27  }
   0x6   :  { %s19_s29 = sshll.u32 %s1418_s28, 4  ;;  %s1419_s30 = smov 128   ;;  %s20_s29 = int_to_ptr.vmem [resolvable:$true] %s19_s29 }
   0x7   :  { %s1420_s6 = smov 8   ;;  %s45_s8 = sshll.u32 %s1578_s3, 4  ;;  %s46_s8 = int_to_ptr.hbm [resolvable:$true] %s45_s8 }
   0x8   :  { %25 = dma.hbm_to_vmem [thread:$0]  %s18_s25, 4096, %s20_s29, [#allocation3], %s1419_s30, %s1419_s30, %s1420_s6  }
   0x9   :  { %s1421_s9 = smov [#allocation7]  }
   0xa   :  { %s47_s10 = sshll.u32 %s1421_s9, 4  ;;  %s48_s10 = int_to_ptr.vmem [resolvable:$true] %s47_s10 }
   0xb   :  { %53 = dma.hbm_to_vmem [thread:$0]  %s46_s8, 2048, %s48_s10, [#allocation6], %s1419_s30, %s1419_s30, %s1420_s6  }
   0xc   :  { %1409 = dma.done.wait [#allocation3], 4096  }
   0xd   :  { %1410 = vsyncadd [#allocation3], 4294963200 }
   0xe   :  { %1411 = dma.done.wait [#allocation6], 4096  }
   0xf   :  { %1412 = vsyncadd [#allocation6], 4294963200  ;;  %v1277_v0 = vld [vmem:[#allocation5 + $0x38] sm:$0xff]  ;;  %v1276_v2 = vld [vmem:[#allocation5 + $0x30] sm:$0xff]  ;;  %s968_s15 = sshll.u32 %s1580_s5, 4  ;;  %s1423_s16 = smov 256   ;;  %s969_s15 = int_to_ptr.hbm [resolvable:$true] %s968_s15 }
  0x10   :  { %v1285_v1 = vld [vmem:[#allocation5 + $0x78] sm:$0xff]  ;;  %392 = vmatpush.bf16.msra.mxu0 %v1277_v0  ;;  %v1284_v3 = vld [vmem:[#allocation5 + $0x70] sm:$0xff]  ;;  %v1275_v4 = vld [vmem:[#allocation5 + $0x28] sm:$0xff]  ;;  %s1424_s17 = smov 16  }
  0x11   :  { %481 = vmatpush.bf16.msra.mxu1 %v1285_v1  ;;  %v1283_v5 = vld [vmem:[#allocation5 + $0x68] sm:$0xff]  ;;  %v1274_v6 = vld [vmem:[#allocation5 + $0x20] sm:$0xff]  ;;  %v1273_v8 = vld [vmem:[#allocation5 + $0x18] sm:$0xff] }
  0x12   :  { %v1282_v7 = vld [vmem:[#allocation5 + $0x60] sm:$0xff]  ;;  %v1281_v9 = vld [vmem:[#allocation5 + $0x58] sm:$0xff]  ;;  %v1272_v10 = vld [vmem:[#allocation5 + $0x10] sm:$0xff] }
  0x13   :  { %v1280_v11 = vld [vmem:[#allocation5 + $0x50] sm:$0xff]  ;;  %v1271_v12 = vld [vmem:[#allocation5 + $0x8] sm:$0xff]  ;;  %v1270_v14 = vld [vmem:[#allocation5] sm:$0xff] }
  0x14   :  { %393 = vmatpush.bf16.msra.mxu0 %v1276_v2  ;;  %v1279_v13 = vld [vmem:[#allocation5 + $0x48] sm:$0xff]  ;;  %v1278_v15 = vld [vmem:[#allocation5 + $0x40] sm:$0xff]  ;;  %v992_v22 = vld [vmem:[#allocation2 + $0x10] sm:$0xf] }
  0x15   :  { %482 = vmatpush.bf16.msra.mxu1 %v1284_v3  ;;  %v984_v16 = vld [vmem:[#allocation2] sm:$0xf]  ;;  %v1239_v17 = vld [vmem:[#allocation2 + $0x4] sm:$0xf0]  ;;  %v1238_v18 = vld [vmem:[#allocation2 + $0x4] sm:$0xf] }
  0x16   :  { %v986_v19 = vld [vmem:[#allocation2 + $0x8] sm:$0xf0]  ;;  %v985_v20 = vor.u32 %v1239_v17, %v984_v16  ;;  %v1241_v23 = vld [vmem:[#allocation2 + $0x14] sm:$0xf0]  ;;  %v1240_v24 = vld [vmem:[#allocation2 + $0x14] sm:$0xf] }
  0x17   :  { %v989_v21 = vor.u32 %v1238_v18, %v986_v19  ;;  %v994_v25 = vld [vmem:[#allocation2 + $0x18] sm:$0xf0]  ;;  %v993_v26 = vor.u32 %v1241_v23, %v992_v22  ;;  %v1000_v28 = vld [vmem:[#allocation2 + $0x20] sm:$0xf]  ;;  %v1243_v29 = vld [vmem:[#allocation2 + $0x24] sm:$0xf0] }
  0x18   :  { %394 = vmatpush.bf16.msra.mxu0 %v1275_v4  ;;  %v997_v27 = vor.u32 %v1240_v24, %v994_v25  ;;  %v1242_v30 = vld [vmem:[#allocation2 + $0x24] sm:$0xf]  ;;  %v1002_v31 = vld [vmem:[#allocation2 + $0x28] sm:$0xf0]  ;;  %v1001_v32 = vor.u32 %v1243_v29, %v1000_v28  ;;  %v1008_v34 = vld [vmem:[#allocation2 + $0x30] sm:$0xf] }
  0x19   :  { %483 = vmatpush.bf16.msra.mxu1 %v1283_v5  ;;  %v1005_v33 = vor.u32 %v1242_v30, %v1002_v31  ;;  %v1245_v35 = vld [vmem:[#allocation2 + $0x34] sm:$0xf0]  ;;  %v1244_v36 = vld [vmem:[#allocation2 + $0x34] sm:$0xf]  ;;  %v1010_v37 = vld [vmem:[#allocation2 + $0x38] sm:$0xf0] }
  0x1a   :  { %v1009_v38 = vor.u32 %v1245_v35, %v1008_v34  ;;  %v1013_v39 = vor.u32 %v1244_v36, %v1010_v37  ;;  %v1016_v40 = vld [vmem:[#allocation2 + $0x40] sm:$0xf]  ;;  %v1247_v41 = vld [vmem:[#allocation2 + $0x44] sm:$0xf0]  ;;  %v1246_v42 = vld [vmem:[#allocation2 + $0x44] sm:$0xf] }
  0x1b   :  { %v1018_v43 = vld [vmem:[#allocation2 + $0x48] sm:$0xf0]  ;;  %v1017_v44 = vor.u32 %v1247_v41, %v1016_v40  ;;  %v1232_v46 = vld [vmem:[#allocation7 + $0x70] sm:$0xf]  ;;  %v1301_v47 = vld [vmem:[#allocation7 + $0x74] sm:$0xf0] }
  0x1c   :  { %395 = vmatpush.bf16.msra.mxu0 %v1274_v6  ;;  %v1021_v45 = vor.u32 %v1246_v42, %v1018_v43  ;;  %v1300_v48 = vld [vmem:[#allocation7 + $0x74] sm:$0xf]  ;;  %v1233_v49 = vor.u32 %v1301_v47, %v1232_v46  ;;  %v1234_v50 = vld [vmem:[#allocation7 + $0x78] sm:$0xf0]  ;;  %v1024_v52 = vld [vmem:[#allocation2 + $0x50] sm:$0xf] }
  0x1d   :  { %484 = vmatpush.bf16.msra.mxu1 %v1282_v7  ;;  %v1237_v51 = vor.u32 %v1300_v48, %v1234_v50  ;;  %v1249_v53 = vld [vmem:[#allocation2 + $0x54] sm:$0xf0]  ;;  %v1248_v54 = vld [vmem:[#allocation2 + $0x54] sm:$0xf]  ;;  %v1026_v55 = vld [vmem:[#allocation2 + $0x58] sm:$0xf0] }
  0x1e   :  { %720 = vmatpush.bf16.msra.mxu2 %v1233_v49  ;;  %v1025_v56 = vor.u32 %v1249_v53, %v1024_v52  ;;  %v1029_v57 = vor.u32 %v1248_v54, %v1026_v55  ;;  %v1224_v58 = vld [vmem:[#allocation7 + $0x60] sm:$0xf]  ;;  %v1299_v59 = vld [vmem:[#allocation7 + $0x64] sm:$0xf0]  ;;  %v1298_v60 = vld [vmem:[#allocation7 + $0x64] sm:$0xf] }
  0x1f   :  { %809 = vmatpush.bf16.msra.mxu3 %v1237_v51  ;;  %v1225_v61 = vor.u32 %v1299_v59, %v1224_v58  ;;  %v1226_v62 = vld [vmem:[#allocation7 + $0x68] sm:$0xf0]  ;;  %v1216_v63 = vld [vmem:[#allocation7 + $0x50] sm:$0xf]  ;;  %v1297_v0 = vld [vmem:[#allocation7 + $0x54] sm:$0xf0] }
  0x20   :  { %396 = vmatpush.bf16.msra.mxu0 %v1273_v8  ;;  %v1229_v1 = vor.u32 %v1298_v60, %v1226_v62  ;;  %v1296_v2 = vld [vmem:[#allocation7 + $0x54] sm:$0xf]  ;;  %v1218_v3 = vld [vmem:[#allocation7 + $0x58] sm:$0xf0]  ;;  %v1217_v4 = vor.u32 %v1297_v0, %v1216_v63  ;;  %v1208_v6 = vld [vmem:[#allocation7 + $0x40] sm:$0xf] }
  0x21   :  { %485 = vmatpush.bf16.msra.mxu1 %v1281_v9  ;;  %v1221_v5 = vor.u32 %v1296_v2, %v1218_v3  ;;  %v1295_v7 = vld [vmem:[#allocation7 + $0x44] sm:$0xf0]  ;;  %v1294_v8 = vld [vmem:[#allocation7 + $0x44] sm:$0xf]  ;;  %v1210_v9 = vld [vmem:[#allocation7 + $0x48] sm:$0xf0] }
  0x22   :  { %721 = vmatpush.bf16.msra.mxu2 %v1225_v61  ;;  %v1200_v18 = vld [vmem:[#allocation7 + $0x30] sm:$0xf]  ;;  %v1293_v19 = vld [vmem:[#allocation7 + $0x34] sm:$0xf0]  ;;  %v1202_v22 = vld [vmem:[#allocation7 + $0x38] sm:$0xf0] }
  0x23   :  { %810 = vmatpush.bf16.msra.mxu3 %v1229_v1  ;;  %v1192_v24 = vld [vmem:[#allocation7 + $0x20] sm:$0xf]  ;;  %v1291_v25 = vld [vmem:[#allocation7 + $0x24] sm:$0xf0]  ;;  %v1194_v28 = vld [vmem:[#allocation7 + $0x28] sm:$0xf0] }
  0x24   :  { %397 = vmatpush.bf16.msra.mxu0 %v1272_v10  ;;  %v1209_v10 = vor.u32 %v1295_v7, %v1208_v6  ;;  %v1184_v30 = vld [vmem:[#allocation7 + $0x10] sm:$0xf]  ;;  %v1289_v31 = vld [vmem:[#allocation7 + $0x14] sm:$0xf0]  ;;  %v1186_v34 = vld [vmem:[#allocation7 + $0x18] sm:$0xf0] }
  0x25   :  { %486 = vmatpush.bf16.msra.mxu1 %v1280_v11  ;;  %v1032_v11 = vld [vmem:[#allocation2 + $0x60] sm:$0xf]  ;;  %v1040_v36 = vld [vmem:[#allocation2 + $0x70] sm:$0xf]  ;;  %v1253_v37 = vld [vmem:[#allocation2 + $0x74] sm:$0xf0] }
  0x26   :  { %722 = vmatpush.bf16.msra.mxu2 %v1217_v4  ;;  %v1286_v40 = vld [vmem:[#allocation7 + $0x4] sm:$0xf]  ;;  %v1252_v41 = vld [vmem:[#allocation2 + $0x74] sm:$0xf]  ;;  %v1042_v42 = vld [vmem:[#allocation2 + $0x78] sm:$0xf0]  ;;  %v1041_v46 = vor.u32 %v1253_v37, %v1040_v36 }
  0x27   :  { %811 = vmatpush.bf16.msra.mxu3 %v1221_v5  ;;  %v1045_v47 = vor.u32 %v1252_v41, %v1042_v42  ;;  %v1048_v48 = vld [vmem:[#allocation2 + $0x80] sm:$0xf]  ;;  %v1255_v49 = vld [vmem:[#allocation2 + $0x84] sm:$0xf0]  ;;  %v1254_v50 = vld [vmem:[#allocation2 + $0x84] sm:$0xf] }
  0x28   :  { %398 = vmatpush.bf16.msra.mxu0 %v1271_v12  ;;  %v1213_v12 = vor.u32 %v1294_v8, %v1210_v9  ;;  %v1050_v51 = vld [vmem:[#allocation2 + $0x88] sm:$0xf0]  ;;  %v1049_v52 = vor.u32 %v1255_v49, %v1048_v48  ;;  %v1056_v63 = vld [vmem:[#allocation2 + $0x90] sm:$0xf]  ;;  %v1257_v0 = vld [vmem:[#allocation2 + $0x94] sm:$0xf0] }
  0x29   :  { %487 = vmatpush.bf16.msra.mxu1 %v1279_v13  ;;  %v1251_v13 = vld [vmem:[#allocation2 + $0x64] sm:$0xf0]  ;;  %v1053_v53 = vor.u32 %v1254_v50, %v1050_v51  ;;  %v1256_v1 = vld [vmem:[#allocation2 + $0x94] sm:$0xf]  ;;  %v1058_v2 = vld [vmem:[#allocation2 + $0x98] sm:$0xf0]  ;;  %v1057_v6 = vor.u32 %v1257_v0, %v1056_v63 }
  0x2a   :  { %723 = vmatpush.bf16.msra.mxu2 %v1209_v10  ;;  %v1033_v16 = vor.u32 %v1251_v13, %v1032_v11  ;;  %v1061_v7 = vor.u32 %v1256_v1, %v1058_v2  ;;  %v1074_v36 = vld [vmem:[#allocation2 + $0xb8] sm:$0xf0]  ;;  %v1080_v50 = vld [vmem:[#allocation2 + $0xc0] sm:$0xf]  ;;  %v1263_v51 = vld [vmem:[#allocation2 + $0xc4] sm:$0xf0] }
  0x2b   :  { %812 = vmatpush.bf16.msra.mxu3 %v1213_v12 }
  0x2c   :  { %399 = vmatpush.bf16.msra.mxu0 %v1270_v14  ;;  %v1250_v14 = vld [vmem:[#allocation2 + $0x64] sm:$0xf] }
  0x2d   :  { %488 = vmatpush.bf16.msra.mxu1 %v1278_v15  ;;  %v1034_v15 = vld [vmem:[#allocation2 + $0x68] sm:$0xf0] }
  0x2e   :  { %v1037_v17 = vor.u32 %v1250_v14, %v1034_v15 }
  0x2f   :  { %400 = vmatmul.bf16.vlgmr.msra.gmra.mxu0 %v985_v20  ;;  %v1292_v20 = vld [vmem:[#allocation7 + $0x34] sm:$0xf] }
  0x30   :  { %489 = vmatmul.bf16.vlgmr.msra.gmra.mxu1 %v989_v21  ;;  %v1201_v21 = vor.u32 %v1293_v19, %v1200_v18  ;;  %v1205_v23 = vor.u32 %v1292_v20, %v1202_v22  ;;  %v1258_v18 = vld [vmem:[#allocation2 + $0xa4] sm:$0xf]  ;;  %v1066_v19 = vld [vmem:[#allocation2 + $0xa8] sm:$0xf0] }
  0x32   :  { %724 = vmatpush.bf16.msra.mxu2 %v1201_v21  ;;  %813 = vmatpush.bf16.msra.mxu3 %v1205_v23 }
  0x3f   :  { %405 = vmatmul.bf16.gmra.mxu0 %v993_v26  ;;  %v1290_v26 = vld [vmem:[#allocation7 + $0x24] sm:$0xf] }
  0x40   :  { %494 = vmatmul.bf16.gmra.mxu1 %v997_v27  ;;  %v1193_v27 = vor.u32 %v1291_v25, %v1192_v24  ;;  %v1197_v29 = vor.u32 %v1290_v26, %v1194_v28  ;;  %v1069_v24 = vor.u32 %v1258_v18, %v1066_v19 }
  0x42   :  { %725 = vmatpush.bf16.msra.mxu2 %v1193_v27  ;;  %814 = vmatpush.bf16.msra.mxu3 %v1197_v29 }
  0x4f   :  { %410 = vmatmul.bf16.gmra.mxu0 %v1001_v32  ;;  %v1288_v32 = vld [vmem:[#allocation7 + $0x14] sm:$0xf] }
  0x50   :  { %499 = vmatmul.bf16.gmra.mxu1 %v1005_v33  ;;  %v1185_v33 = vor.u32 %v1289_v31, %v1184_v30  ;;  %v1189_v35 = vor.u32 %v1288_v32, %v1186_v34  ;;  %v1261_v34 = vld [vmem:[#allocation2 + $0xb4] sm:$0xf0] }
  0x52   :  { %726 = vmatpush.bf16.msra.mxu2 %v1185_v33  ;;  %815 = vmatpush.bf16.msra.mxu3 %v1189_v35  ;;  %v1072_v33 = vld [vmem:[#allocation2 + $0xb0] sm:$0xf]  ;;  %v1260_v35 = vld [vmem:[#allocation2 + $0xb4] sm:$0xf] }
  0x53   :  { %v1077_v41 = vor.u32 %v1260_v35, %v1074_v36 }
  0x5f   :  { %415 = vmatmul.bf16.gmra.mxu0 %v1009_v38  ;;  %v1176_v38 = vld [vmem:[#allocation7] sm:$0xf] }
  0x60   :  { %504 = vmatmul.bf16.gmra.mxu1 %v1013_v39  ;;  %v1287_v39 = vld [vmem:[#allocation7 + $0x4] sm:$0xf0] }
  0x61   :  { %v1177_v43 = vor.u32 %v1287_v39, %v1176_v38 }
  0x63   :  { %727 = vmatpush.bf16.msra.mxu2 %v1177_v43 }
  0x6f   :  { %420 = vmatmul.bf16.gmra.mxu0 %v1017_v44  ;;  %v1178_v44 = vld [vmem:[#allocation7 + $0x8] sm:$0xf0] }
  0x70   :  { %509 = vmatmul.bf16.gmra.mxu1 %v1021_v45  ;;  %v1181_v45 = vor.u32 %v1286_v40, %v1178_v44  ;;  %v1073_v40 = vor.u32 %v1261_v34, %v1072_v33 }
  0x72   :  { %816 = vmatpush.bf16.msra.mxu3 %v1181_v45 }
  0x7f   :  { %425 = vmatmul.bf16.gmra.mxu0 %v1025_v56  ;;  %v1467_v56 = vld [vmem:[%s1577_s2] ss:$0 sm:$0xff] }
  0x80   :  { %514 = vmatmul.bf16.gmra.mxu1 %v1029_v57 }
  0x8f   :  { %430 = vmatmul.bf16.gmra.mxu0 %v1033_v16  ;;  %v1064_v16 = vld [vmem:[#allocation2 + $0xa0] sm:$0xf] }
  0x90   :  { %519 = vmatmul.bf16.gmra.mxu1 %v1037_v17  ;;  %v1259_v17 = vld [vmem:[#allocation2 + $0xa4] sm:$0xf0] }
  0x91   :  { %v1065_v23 = vor.u32 %v1259_v17, %v1064_v16 }
  0x9f   :  { %435 = vmatmul.bf16.gmra.mxu0 %v1041_v46 }
  0xa0   :  { %524 = vmatmul.bf16.gmra.mxu1 %v1045_v47 }
  0xac   :  { %v401_v54 = vpop.f32.mrf.mxu0 }
  0xad   :  { %v490_v55 = vpop.f32.mrf.mxu1  ;;  %v402_v57 = vadd.f32 %v1467_v56, %v401_v54 }
  0xaf   :  { %440 = vmatmul.bf16.gmra.mxu0 %v1049_v52  ;;  %v491_v60 = vadd.f32 %v490_v55, %v402_v57  ;;  %v1262_v52 = vld [vmem:[#allocation2 + $0xc4] sm:$0xf] }
  0xb0   :  { %529 = vmatmul.bf16.gmra.mxu1 %v1053_v53  ;;  %v1082_v53 = vld [vmem:[#allocation2 + $0xc8] sm:$0xf0] }
  0xb1   :  { %v570_v3 = vmax.f32 %v491_v60, 0.0 }
  0xb4   :  { %v403_v58 = vpop.f32.mrf.mxu0 }
  0xb5   :  { %v492_v59 = vpop.f32.mrf.mxu1  ;;  %v404_v61 = vadd.f32 %v1467_v56, %v403_v58  ;;  %v1081_v58 = vor.u32 %v1263_v51, %v1080_v50 }
  0xb7   :  { %v493_v62 = vadd.f32 %v492_v59, %v404_v61  ;;  %v1085_v59 = vor.u32 %v1262_v52, %v1082_v53 }
  0xb9   :  { %v571_v4 = vmax.f32 %v493_v62, 0.0 }
  0xbb   :  { %v619_v5 = vpack.c.bf16 %v571_v4, %v570_v3  ;;  %v1088_v4 = vld [vmem:[#allocation2 + $0xd0] sm:$0xf] }
  0xbc   :  { %v406_v8 = vpop.f32.mrf.mxu0 }
  0xbd   :  { %v495_v9 = vpop.f32.mrf.mxu1  ;;  %728 = vmatmul.bf16.vlgmr.msra.gmra.mxu2 %v619_v5  ;;  %817 = vmatmul.bf16.vlgmr.msra.gmra.mxu3 %v619_v5  ;;  %v407_v10 = vadd.f32 %v1467_v56, %v406_v8  ;;  %v1265_v5 = vld [vmem:[#allocation2 + $0xd4] sm:$0xf0] }
  0xbf   :  { %445 = vmatmul.bf16.gmra.mxu0 %v1057_v6  ;;  %v496_v13 = vadd.f32 %v495_v9, %v407_v10  ;;  %v1264_v6 = vld [vmem:[#allocation2 + $0xd4] sm:$0xf] }
  0xc0   :  { %534 = vmatmul.bf16.gmra.mxu1 %v1061_v7  ;;  %v1090_v7 = vld [vmem:[#allocation2 + $0xd8] sm:$0xf0] }
  0xc1   :  { %v572_v20 = vmax.f32 %v496_v13, 0.0 }
  0xc4   :  { %v408_v11 = vpop.f32.mrf.mxu0 }
  0xc5   :  { %v497_v12 = vpop.f32.mrf.mxu1  ;;  %v409_v14 = vadd.f32 %v1467_v56, %v408_v11  ;;  %v1089_v11 = vor.u32 %v1265_v5, %v1088_v4  ;;  %v618_v5 = vld [vmem:[%s1579_s4] sm:$0x3]  ;;  %s1422_s4 = smov [#allocation8]  }
  0xc6   :  { %s966_s12 = sshll.u32 %s1422_s4, 4  ;;  %s967_s12 = int_to_ptr.vmem [resolvable:$true] %s966_s12 }
  0xc7   :  { %v498_v15 = vadd.f32 %v497_v12, %v409_v14  ;;  %v1093_v12 = vor.u32 %v1264_v6, %v1090_v7 }
  0xc9   :  { %v573_v21 = vmax.f32 %v498_v15, 0.0 }
  0xcb   :  { %v620_v22 = vpack.c.bf16 %v573_v21, %v572_v20  ;;  %v1096_v21 = vld [vmem:[#allocation2 + $0xe0] sm:$0xf] }
  0xcc   :  { %v411_v25 = vpop.f32.mrf.mxu0 }
  0xcd   :  { %v500_v26 = vpop.f32.mrf.mxu1  ;;  %733 = vmatmul.bf16.gmra.mxu2 %v620_v22  ;;  %822 = vmatmul.bf16.gmra.mxu3 %v620_v22  ;;  %v412_v27 = vadd.f32 %v1467_v56, %v411_v25  ;;  %v1267_v22 = vld [vmem:[#allocation2 + $0xe4] sm:$0xf0] }
  0xcf   :  { %450 = vmatmul.bf16.gmra.mxu0 %v1065_v23  ;;  %v501_v30 = vadd.f32 %v500_v26, %v412_v27  ;;  %v1266_v23 = vld [vmem:[#allocation2 + $0xe4] sm:$0xf] }
  0xd0   :  { %539 = vmatmul.bf16.gmra.mxu1 %v1069_v24  ;;  %v1098_v24 = vld [vmem:[#allocation2 + $0xe8] sm:$0xf0] }
  0xd1   :  { %v574_v37 = vmax.f32 %v501_v30, 0.0 }
  0xd4   :  { %v413_v28 = vpop.f32.mrf.mxu0 }
  0xd5   :  { %v502_v29 = vpop.f32.mrf.mxu1  ;;  %v414_v31 = vadd.f32 %v1467_v56, %v413_v28  ;;  %v1097_v28 = vor.u32 %v1267_v22, %v1096_v21 }
  0xd7   :  { %v503_v32 = vadd.f32 %v502_v29, %v414_v31  ;;  %v1101_v29 = vor.u32 %v1266_v23, %v1098_v24 }
  0xd9   :  { %v575_v38 = vmax.f32 %v503_v32, 0.0 }
  0xdb   :  { %v621_v39 = vpack.c.bf16 %v575_v38, %v574_v37  ;;  %v1104_v38 = vld [vmem:[#allocation2 + $0xf0] sm:$0xf] }
  0xdc   :  { %v416_v42 = vpop.f32.mrf.mxu0 }
  0xdd   :  { %v505_v43 = vpop.f32.mrf.mxu1  ;;  %738 = vmatmul.bf16.gmra.mxu2 %v621_v39  ;;  %827 = vmatmul.bf16.gmra.mxu3 %v621_v39  ;;  %v417_v44 = vadd.f32 %v1467_v56, %v416_v42  ;;  %v1269_v39 = vld [vmem:[#allocation2 + $0xf4] sm:$0xf0] }
  0xdf   :  { %455 = vmatmul.bf16.gmra.mxu0 %v1073_v40  ;;  %v506_v47 = vadd.f32 %v505_v43, %v417_v44  ;;  %v1268_v40 = vld [vmem:[#allocation2 + $0xf4] sm:$0xf] }
  0xe0   :  { %544 = vmatmul.bf16.gmra.mxu1 %v1077_v41  ;;  %v1106_v41 = vld [vmem:[#allocation2 + $0xf8] sm:$0xf0] }
  0xe1   :  { %v576_v54 = vmax.f32 %v506_v47, 0.0 }
  0xe4   :  { %v418_v45 = vpop.f32.mrf.mxu0 }
  0xe5   :  { %v507_v46 = vpop.f32.mrf.mxu1  ;;  %v419_v48 = vadd.f32 %v1467_v56, %v418_v45  ;;  %v1105_v45 = vor.u32 %v1269_v39, %v1104_v38 }
  0xe7   :  { %v508_v49 = vadd.f32 %v507_v46, %v419_v48  ;;  %v1109_v46 = vor.u32 %v1268_v40, %v1106_v41 }
  0xe9   :  { %v577_v55 = vmax.f32 %v508_v49, 0.0 }
  0xeb   :  { %v622_v57 = vpack.c.bf16 %v577_v55, %v576_v54 }
  0xec   :  { %v421_v60 = vpop.f32.mrf.mxu0 }
  0xed   :  { %v510_v61 = vpop.f32.mrf.mxu1  ;;  %743 = vmatmul.bf16.gmra.mxu2 %v622_v57  ;;  %832 = vmatmul.bf16.gmra.mxu3 %v622_v57  ;;  %v422_v62 = vadd.f32 %v1467_v56, %v421_v60 }
  0xef   :  { %460 = vmatmul.bf16.gmra.mxu0 %v1081_v58  ;;  %v511_v1 = vadd.f32 %v510_v61, %v422_v62 }
  0xf0   :  { %549 = vmatmul.bf16.gmra.mxu1 %v1085_v59 }
  0xf1   :  { %v578_v8 = vmax.f32 %v511_v1, 0.0 }
  0xf4   :  { %v423_v63 = vpop.f32.mrf.mxu0 }
  0xf5   :  { %v512_v0 = vpop.f32.mrf.mxu1  ;;  %v424_v2 = vadd.f32 %v1467_v56, %v423_v63 }
  0xf7   :  { %v513_v3 = vadd.f32 %v512_v0, %v424_v2 }
  0xf9   :  { %v579_v9 = vmax.f32 %v513_v3, 0.0 }
  0xfb   :  { %v623_v10 = vpack.c.bf16 %v579_v9, %v578_v8  ;;  %v1490_v9 = vperm.slane %v618_v5, 0 }
  0xfc   :  { %v426_v13 = vpop.f32.mrf.mxu0 }
  0xfd   :  { %v515_v14 = vpop.f32.mrf.mxu1  ;;  %748 = vmatmul.bf16.gmra.mxu2 %v623_v10  ;;  %837 = vmatmul.bf16.gmra.mxu3 %v623_v10  ;;  %v427_v15 = vadd.f32 %v1467_v56, %v426_v13  ;;  %v1492_v10 = vperm.slane %v618_v5, 1 }
  0xff   :  { %465 = vmatmul.bf16.gmra.mxu0 %v1089_v11  ;;  %v516_v18 = vadd.f32 %v515_v14, %v427_v15 }
 0x100   :  { %554 = vmatmul.bf16.gmra.mxu1 %v1093_v12 }
 0x101   :  { %v580_v25 = vmax.f32 %v516_v18, 0.0 }
 0x104   :  { %v428_v16 = vpop.f32.mrf.mxu0 }
 0x105   :  { %v517_v17 = vpop.f32.mrf.mxu1  ;;  %v429_v19 = vadd.f32 %v1467_v56, %v428_v16 }
 0x107   :  { %v518_v20 = vadd.f32 %v517_v17, %v429_v19 }
 0x109   :  { %v581_v26 = vmax.f32 %v518_v20, 0.0 }
 0x10b   :  { %v624_v27 = vpack.c.bf16 %v581_v26, %v580_v25 }
 0x10c   :  { %v431_v30 = vpop.f32.mrf.mxu0 }
 0x10d   :  { %v520_v31 = vpop.f32.mrf.mxu1  ;;  %753 = vmatmul.bf16.gmra.mxu2 %v624_v27  ;;  %842 = vmatmul.bf16.gmra.mxu3 %v624_v27  ;;  %v432_v32 = vadd.f32 %v1467_v56, %v431_v30 }
 0x10f   :  { %470 = vmatmul.bf16.gmra.mxu0 %v1097_v28  ;;  %v521_v35 = vadd.f32 %v520_v31, %v432_v32 }
 0x110   :  { %559 = vmatmul.bf16.gmra.mxu1 %v1101_v29 }
 0x111   :  { %v582_v42 = vmax.f32 %v521_v35, 0.0 }
 0x114   :  { %v433_v33 = vpop.f32.mrf.mxu0 }
 0x115   :  { %v522_v34 = vpop.f32.mrf.mxu1  ;;  %v434_v36 = vadd.f32 %v1467_v56, %v433_v33 }
 0x117   :  { %v523_v37 = vadd.f32 %v522_v34, %v434_v36 }
 0x119   :  { %v583_v43 = vmax.f32 %v523_v37, 0.0 }
 0x11b   :  { %v625_v44 = vpack.c.bf16 %v583_v43, %v582_v42 }
 0x11c   :  { %v436_v47 = vpop.f32.mrf.mxu0 }
 0x11d   :  { %v525_v48 = vpop.f32.mrf.mxu1  ;;  %758 = vmatmul.bf16.gmra.mxu2 %v625_v44  ;;  %847 = vmatmul.bf16.gmra.mxu3 %v625_v44  ;;  %v437_v49 = vadd.f32 %v1467_v56, %v436_v47 }
 0x11f   :  { %475 = vmatmul.bf16.gmra.mxu0 %v1105_v45  ;;  %v526_v52 = vadd.f32 %v525_v48, %v437_v49 }
 0x120   :  { %564 = vmatmul.bf16.gmra.mxu1 %v1109_v46 }
 0x121   :  { %v584_v55 = vmax.f32 %v526_v52, 0.0 }
 0x124   :  { %v438_v50 = vpop.f32.mrf.mxu0 }
 0x125   :  { %v527_v51 = vpop.f32.mrf.mxu1  ;;  %v439_v53 = vadd.f32 %v1467_v56, %v438_v50 }
 0x127   :  { %v528_v54 = vadd.f32 %v527_v51, %v439_v53 }
 0x129   :  { %v585_v57 = vmax.f32 %v528_v54, 0.0 }
 0x12b   :  { %v626_v58 = vpack.c.bf16 %v585_v57, %v584_v55 }
 0x12c   :  { %v441_v59 = vpop.f32.mrf.mxu0 }
 0x12d   :  { %v530_v60 = vpop.f32.mrf.mxu1  ;;  %763 = vmatmul.bf16.gmra.mxu2 %v626_v58  ;;  %852 = vmatmul.bf16.gmra.mxu3 %v626_v58  ;;  %v442_v61 = vadd.f32 %v1467_v56, %v441_v59 }
 0x12f   :  { %v531_v0 = vadd.f32 %v530_v60, %v442_v61 }
 0x131   :  { %v586_v3 = vmax.f32 %v531_v0, 0.0 }
 0x134   :  { %v443_v62 = vpop.f32.mrf.mxu0 }
 0x135   :  { %v532_v63 = vpop.f32.mrf.mxu1  ;;  %v444_v1 = vadd.f32 %v1467_v56, %v443_v62 }
 0x137   :  { %v533_v2 = vadd.f32 %v532_v63, %v444_v1 }
 0x139   :  { %v587_v4 = vmax.f32 %v533_v2, 0.0 }
 0x13b   :  { %v627_v6 = vpack.c.bf16 %v587_v4, %v586_v3 }
 0x13c   :  { %v446_v7 = vpop.f32.mrf.mxu0 }
 0x13d   :  { %v535_v8 = vpop.f32.mrf.mxu1  ;;  %768 = vmatmul.bf16.gmra.mxu2 %v627_v6  ;;  %857 = vmatmul.bf16.gmra.mxu3 %v627_v6  ;;  %v447_v13 = vadd.f32 %v1467_v56, %v446_v7 }
 0x13f   :  { %v536_v18 = vadd.f32 %v535_v8, %v447_v13 }
 0x140   :  { %v729_v11 = vpop.f32.mrf.mxu2  ;;  %v818_v12 = vpop.f32.mrf.mxu3 }
 0x141   :  { %v730_v14 = vadd.f32 %v729_v11, %v1490_v9  ;;  %v819_v15 = vadd.f32 %v818_v12, %v1492_v10  ;;  %v588_v23 = vmax.f32 %v536_v18, 0.0 }
 0x143   :  { %898 = vst [vmem:[#allocation8] sm:$0xff] %v730_v14 }
 0x144   :  { %899 = vst [vmem:[#allocation8 + $0x8] sm:$0xff] %v819_v15  ;;  %v448_v16 = vpop.f32.mrf.mxu0 }
 0x145   :  { %v537_v17 = vpop.f32.mrf.mxu1  ;;  %v449_v19 = vadd.f32 %v1467_v56, %v448_v16 }
 0x147   :  { %v538_v20 = vadd.f32 %v537_v17, %v449_v19 }
 0x148   :  { %v731_v21 = vpop.f32.mrf.mxu2  ;;  %v820_v22 = vpop.f32.mrf.mxu3 }
 0x149   :  { %v589_v24 = vmax.f32 %v538_v20, 0.0  ;;  %v732_v25 = vadd.f32 %v731_v21, %v1490_v9  ;;  %v821_v26 = vadd.f32 %v820_v22, %v1492_v10 }
 0x14b   :  { %900 = vst [vmem:[#allocation8 + $0x10] sm:$0xff] %v732_v25  ;;  %v628_v27 = vpack.c.bf16 %v589_v24, %v588_v23 }
 0x14c   :  { %901 = vst [vmem:[#allocation8 + $0x18] sm:$0xff] %v821_v26  ;;  %v451_v28 = vpop.f32.mrf.mxu0 }
 0x14d   :  { %v540_v29 = vpop.f32.mrf.mxu1  ;;  %773 = vmatmul.bf16.gmra.mxu2 %v628_v27  ;;  %862 = vmatmul.bf16.gmra.mxu3 %v628_v27  ;;  %v452_v32 = vadd.f32 %v1467_v56, %v451_v28 }
 0x14f   :  { %v541_v37 = vadd.f32 %v540_v29, %v452_v32 }
 0x150   :  { %v734_v30 = vpop.f32.mrf.mxu2  ;;  %v823_v31 = vpop.f32.mrf.mxu3 }
 0x151   :  { %v735_v33 = vadd.f32 %v734_v30, %v1490_v9  ;;  %v824_v34 = vadd.f32 %v823_v31, %v1492_v10  ;;  %v590_v42 = vmax.f32 %v541_v37, 0.0 }
 0x153   :  { %902 = vst [vmem:[#allocation8 + $0x20] sm:$0xff] %v735_v33 }
 0x154   :  { %903 = vst [vmem:[#allocation8 + $0x28] sm:$0xff] %v824_v34  ;;  %v453_v35 = vpop.f32.mrf.mxu0 }
 0x155   :  { %v542_v36 = vpop.f32.mrf.mxu1  ;;  %v454_v38 = vadd.f32 %v1467_v56, %v453_v35 }
 0x157   :  { %v543_v39 = vadd.f32 %v542_v36, %v454_v38 }
 0x158   :  { %v736_v40 = vpop.f32.mrf.mxu2  ;;  %v825_v41 = vpop.f32.mrf.mxu3 }
 0x159   :  { %v591_v43 = vmax.f32 %v543_v39, 0.0  ;;  %v737_v44 = vadd.f32 %v736_v40, %v1490_v9  ;;  %v826_v45 = vadd.f32 %v825_v41, %v1492_v10 }
 0x15b   :  { %904 = vst [vmem:[#allocation8 + $0x30] sm:$0xff] %v737_v44  ;;  %v629_v46 = vpack.c.bf16 %v591_v43, %v590_v42 }
 0x15c   :  { %905 = vst [vmem:[#allocation8 + $0x38] sm:$0xff] %v826_v45  ;;  %v456_v47 = vpop.f32.mrf.mxu0 }
 0x15d   :  { %v545_v48 = vpop.f32.mrf.mxu1  ;;  %778 = vmatmul.bf16.gmra.mxu2 %v629_v46  ;;  %867 = vmatmul.bf16.gmra.mxu3 %v629_v46  ;;  %v457_v51 = vadd.f32 %v1467_v56, %v456_v47 }
 0x15f   :  { %v546_v57 = vadd.f32 %v545_v48, %v457_v51 }
 0x160   :  { %v739_v49 = vpop.f32.mrf.mxu2  ;;  %v828_v50 = vpop.f32.mrf.mxu3 }
 0x161   :  { %v740_v52 = vadd.f32 %v739_v49, %v1490_v9  ;;  %v829_v53 = vadd.f32 %v828_v50, %v1492_v10  ;;  %v592_v62 = vmax.f32 %v546_v57, 0.0 }
 0x163   :  { %906 = vst [vmem:[#allocation8 + $0x40] sm:$0xff] %v740_v52 }
 0x164   :  { %907 = vst [vmem:[#allocation8 + $0x48] sm:$0xff] %v829_v53  ;;  %v458_v54 = vpop.f32.mrf.mxu0 }
 0x165   :  { %v547_v55 = vpop.f32.mrf.mxu1  ;;  %v459_v58 = vadd.f32 %v1467_v56, %v458_v54 }
 0x167   :  { %v548_v59 = vadd.f32 %v547_v55, %v459_v58 }
 0x168   :  { %v741_v60 = vpop.f32.mrf.mxu2  ;;  %v830_v61 = vpop.f32.mrf.mxu3 }
 0x169   :  { %v593_v63 = vmax.f32 %v548_v59, 0.0  ;;  %v742_v0 = vadd.f32 %v741_v60, %v1490_v9  ;;  %v831_v1 = vadd.f32 %v830_v61, %v1492_v10 }
 0x16b   :  { %908 = vst [vmem:[#allocation8 + $0x50] sm:$0xff] %v742_v0  ;;  %v630_v2 = vpack.c.bf16 %v593_v63, %v592_v62 }
 0x16c   :  { %909 = vst [vmem:[#allocation8 + $0x58] sm:$0xff] %v831_v1  ;;  %v461_v3 = vpop.f32.mrf.mxu0 }
 0x16d   :  { %v550_v4 = vpop.f32.mrf.mxu1  ;;  %783 = vmatmul.bf16.gmra.mxu2 %v630_v2  ;;  %872 = vmatmul.bf16.gmra.mxu3 %v630_v2  ;;  %v462_v7 = vadd.f32 %v1467_v56, %v461_v3 }
 0x16f   :  { %v551_v14 = vadd.f32 %v550_v4, %v462_v7 }
 0x170   :  { %v744_v5 = vpop.f32.mrf.mxu2  ;;  %v833_v6 = vpop.f32.mrf.mxu3 }
 0x171   :  { %v745_v8 = vadd.f32 %v744_v5, %v1490_v9  ;;  %v834_v11 = vadd.f32 %v833_v6, %v1492_v10  ;;  %v594_v19 = vmax.f32 %v551_v14, 0.0 }
 0x173   :  { %910 = vst [vmem:[#allocation8 + $0x60] sm:$0xff] %v745_v8 }
 0x174   :  { %911 = vst [vmem:[#allocation8 + $0x68] sm:$0xff] %v834_v11  ;;  %v463_v12 = vpop.f32.mrf.mxu0 }
 0x175   :  { %v552_v13 = vpop.f32.mrf.mxu1  ;;  %v464_v15 = vadd.f32 %v1467_v56, %v463_v12 }
 0x177   :  { %v553_v16 = vadd.f32 %v552_v13, %v464_v15 }
 0x178   :  { %v746_v17 = vpop.f32.mrf.mxu2  ;;  %v835_v18 = vpop.f32.mrf.mxu3 }
 0x179   :  { %v595_v20 = vmax.f32 %v553_v16, 0.0  ;;  %v747_v21 = vadd.f32 %v746_v17, %v1490_v9  ;;  %v836_v22 = vadd.f32 %v835_v18, %v1492_v10 }
 0x17b   :  { %v631_v23 = vpack.c.bf16 %v595_v20, %v594_v19  ;;  %912 = vst [vmem:[#allocation8 + $0x70] sm:$0xff] %v747_v21 }
 0x17c   :  { %913 = vst [vmem:[#allocation8 + $0x78] sm:$0xff] %v836_v22  ;;  %v466_v24 = vpop.f32.mrf.mxu0 }
 0x17d   :  { %v555_v25 = vpop.f32.mrf.mxu1  ;;  %788 = vmatmul.bf16.gmra.mxu2 %v631_v23  ;;  %877 = vmatmul.bf16.gmra.mxu3 %v631_v23  ;;  %v467_v28 = vadd.f32 %v1467_v56, %v466_v24 }
 0x17f   :  { %v556_v33 = vadd.f32 %v555_v25, %v467_v28 }
 0x180   :  { %v749_v26 = vpop.f32.mrf.mxu2  ;;  %v838_v27 = vpop.f32.mrf.mxu3 }
 0x181   :  { %v750_v29 = vadd.f32 %v749_v26, %v1490_v9  ;;  %v839_v30 = vadd.f32 %v838_v27, %v1492_v10  ;;  %v596_v38 = vmax.f32 %v556_v33, 0.0 }
 0x183   :  { %914 = vst [vmem:[#allocation8 + $0x80] sm:$0xff] %v750_v29 }
 0x184   :  { %915 = vst [vmem:[#allocation8 + $0x88] sm:$0xff] %v839_v30  ;;  %v468_v31 = vpop.f32.mrf.mxu0 }
 0x185   :  { %v557_v32 = vpop.f32.mrf.mxu1  ;;  %v469_v34 = vadd.f32 %v1467_v56, %v468_v31 }
 0x187   :  { %v558_v35 = vadd.f32 %v557_v32, %v469_v34 }
 0x188   :  { %v751_v36 = vpop.f32.mrf.mxu2  ;;  %v840_v37 = vpop.f32.mrf.mxu3 }
 0x189   :  { %v597_v39 = vmax.f32 %v558_v35, 0.0  ;;  %v752_v40 = vadd.f32 %v751_v36, %v1490_v9  ;;  %v841_v41 = vadd.f32 %v840_v37, %v1492_v10 }
 0x18b   :  { %v632_v42 = vpack.c.bf16 %v597_v39, %v596_v38  ;;  %916 = vst [vmem:[#allocation8 + $0x90] sm:$0xff] %v752_v40 }
 0x18c   :  { %917 = vst [vmem:[#allocation8 + $0x98] sm:$0xff] %v841_v41  ;;  %v471_v43 = vpop.f32.mrf.mxu0 }
 0x18d   :  { %v560_v44 = vpop.f32.mrf.mxu1  ;;  %793 = vmatmul.bf16.gmra.mxu2 %v632_v42  ;;  %882 = vmatmul.bf16.gmra.mxu3 %v632_v42  ;;  %v472_v47 = vadd.f32 %v1467_v56, %v471_v43 }
 0x18f   :  { %v561_v52 = vadd.f32 %v560_v44, %v472_v47 }
 0x190   :  { %v754_v45 = vpop.f32.mrf.mxu2  ;;  %v843_v46 = vpop.f32.mrf.mxu3 }
 0x191   :  { %v755_v48 = vadd.f32 %v754_v45, %v1490_v9  ;;  %v844_v49 = vadd.f32 %v843_v46, %v1492_v10  ;;  %v598_v58 = vmax.f32 %v561_v52, 0.0 }
 0x193   :  { %918 = vst [vmem:[#allocation8 + $0xa0] sm:$0xff] %v755_v48 }
 0x194   :  { %919 = vst [vmem:[#allocation8 + $0xa8] sm:$0xff] %v844_v49  ;;  %v473_v50 = vpop.f32.mrf.mxu0 }
 0x195   :  { %v562_v51 = vpop.f32.mrf.mxu1  ;;  %v474_v53 = vadd.f32 %v1467_v56, %v473_v50 }
 0x197   :  { %v563_v54 = vadd.f32 %v562_v51, %v474_v53 }
 0x198   :  { %v756_v55 = vpop.f32.mrf.mxu2  ;;  %v845_v57 = vpop.f32.mrf.mxu3 }
 0x199   :  { %v599_v59 = vmax.f32 %v563_v54, 0.0  ;;  %v757_v60 = vadd.f32 %v756_v55, %v1490_v9  ;;  %v846_v61 = vadd.f32 %v845_v57, %v1492_v10 }
 0x19b   :  { %v633_v62 = vpack.c.bf16 %v599_v59, %v598_v58  ;;  %920 = vst [vmem:[#allocation8 + $0xb0] sm:$0xff] %v757_v60 }
 0x19c   :  { %921 = vst [vmem:[#allocation8 + $0xb8] sm:$0xff] %v846_v61  ;;  %v476_v63 = vpop.f32.mrf.mxu0 }
 0x19d   :  { %v565_v0 = vpop.f32.mrf.mxu1  ;;  %798 = vmatmul.bf16.gmra.mxu2 %v633_v62  ;;  %887 = vmatmul.bf16.gmra.mxu3 %v633_v62  ;;  %v477_v3 = vadd.f32 %v1467_v56, %v476_v63 }
 0x19f   :  { %v566_v7 = vadd.f32 %v565_v0, %v477_v3 }
 0x1a0   :  { %v759_v1 = vpop.f32.mrf.mxu2  ;;  %v848_v2 = vpop.f32.mrf.mxu3 }
 0x1a1   :  { %v760_v4 = vadd.f32 %v759_v1, %v1490_v9  ;;  %v849_v5 = vadd.f32 %v848_v2, %v1492_v10  ;;  %v600_v15 = vmax.f32 %v566_v7, 0.0 }
 0x1a3   :  { %922 = vst [vmem:[#allocation8 + $0xc0] sm:$0xff] %v760_v4 }
 0x1a4   :  { %923 = vst [vmem:[#allocation8 + $0xc8] sm:$0xff] %v849_v5  ;;  %v478_v6 = vpop.f32.mrf.mxu0 }
 0x1a5   :  { %v479_v8 = vadd.f32 %v1467_v56, %v478_v6  ;;  %v567_v11 = vpop.f32.mrf.mxu1 }
 0x1a7   :  { %v568_v12 = vadd.f32 %v567_v11, %v479_v8 }
 0x1a8   :  { %v761_v13 = vpop.f32.mrf.mxu2  ;;  %v850_v14 = vpop.f32.mrf.mxu3 }
 0x1a9   :  { %v601_v16 = vmax.f32 %v568_v12, 0.0  ;;  %v762_v17 = vadd.f32 %v761_v13, %v1490_v9  ;;  %v851_v18 = vadd.f32 %v850_v14, %v1492_v10 }
 0x1ab   :  { %v634_v19 = vpack.c.bf16 %v601_v16, %v600_v15  ;;  %924 = vst [vmem:[#allocation8 + $0xd0] sm:$0xff] %v762_v17 }
 0x1ac   :  { %925 = vst [vmem:[#allocation8 + $0xd8] sm:$0xff] %v851_v18 }
 0x1ad   :  { %803 = vmatmul.bf16.gmra.mxu2 %v634_v19  ;;  %892 = vmatmul.bf16.gmra.mxu3 %v634_v19 }
 0x1b0   :  { %v764_v20 = vpop.f32.mrf.mxu2  ;;  %v853_v21 = vpop.f32.mrf.mxu3 }
 0x1b1   :  { %v765_v22 = vadd.f32 %v764_v20, %v1490_v9  ;;  %v854_v56 = vadd.f32 %v853_v21, %v1492_v10 }
 0x1b3   :  { %926 = vst [vmem:[#allocation8 + $0xe0] sm:$0xff] %v765_v22 }
 0x1b4   :  { %927 = vst [vmem:[#allocation8 + $0xe8] sm:$0xff] %v854_v56 }
 0x1b8   :  { %v766_v23 = vpop.f32.mrf.mxu2  ;;  %v855_v24 = vpop.f32.mrf.mxu3 }
 0x1b9   :  { %v767_v25 = vadd.f32 %v766_v23, %v1490_v9  ;;  %v856_v26 = vadd.f32 %v855_v24, %v1492_v10 }
 0x1bb   :  { %928 = vst [vmem:[#allocation8 + $0xf0] sm:$0xff] %v767_v25 }
 0x1bc   :  { %929 = vst [vmem:[#allocation8 + $0xf8] sm:$0xff] %v856_v26 }
 0x1c0   :  { %v769_v27 = vpop.f32.mrf.mxu2  ;;  %v858_v28 = vpop.f32.mrf.mxu3 }
 0x1c1   :  { %v770_v29 = vadd.f32 %v769_v27, %v1490_v9  ;;  %v859_v30 = vadd.f32 %v858_v28, %v1492_v10 }
 0x1c3   :  { %930 = vst [vmem:[#allocation8 + $0x100] sm:$0xff] %v770_v29 }
 0x1c4   :  { %931 = vst [vmem:[#allocation8 + $0x108] sm:$0xff] %v859_v30 }
 0x1c8   :  { %v771_v31 = vpop.f32.mrf.mxu2  ;;  %v860_v32 = vpop.f32.mrf.mxu3 }
 0x1c9   :  { %v772_v33 = vadd.f32 %v771_v31, %v1490_v9  ;;  %v861_v34 = vadd.f32 %v860_v32, %v1492_v10 }
 0x1cb   :  { %932 = vst [vmem:[#allocation8 + $0x110] sm:$0xff] %v772_v33 }
 0x1cc   :  { %933 = vst [vmem:[#allocation8 + $0x118] sm:$0xff] %v861_v34 }
 0x1d0   :  { %v774_v35 = vpop.f32.mrf.mxu2  ;;  %v863_v36 = vpop.f32.mrf.mxu3 }
 0x1d1   :  { %v775_v37 = vadd.f32 %v774_v35, %v1490_v9  ;;  %v864_v38 = vadd.f32 %v863_v36, %v1492_v10 }
 0x1d3   :  { %934 = vst [vmem:[#allocation8 + $0x120] sm:$0xff] %v775_v37 }
 0x1d4   :  { %935 = vst [vmem:[#allocation8 + $0x128] sm:$0xff] %v864_v38 }
 0x1d8   :  { %v776_v39 = vpop.f32.mrf.mxu2  ;;  %v865_v40 = vpop.f32.mrf.mxu3 }
 0x1d9   :  { %v777_v41 = vadd.f32 %v776_v39, %v1490_v9  ;;  %v866_v42 = vadd.f32 %v865_v40, %v1492_v10 }
 0x1db   :  { %936 = vst [vmem:[#allocation8 + $0x130] sm:$0xff] %v777_v41 }
 0x1dc   :  { %937 = vst [vmem:[#allocation8 + $0x138] sm:$0xff] %v866_v42 }
 0x1e0   :  { %v779_v43 = vpop.f32.mrf.mxu2  ;;  %v868_v44 = vpop.f32.mrf.mxu3 }
 0x1e1   :  { %v780_v45 = vadd.f32 %v779_v43, %v1490_v9  ;;  %v869_v46 = vadd.f32 %v868_v44, %v1492_v10 }
 0x1e3   :  { %938 = vst [vmem:[#allocation8 + $0x140] sm:$0xff] %v780_v45 }
 0x1e4   :  { %939 = vst [vmem:[#allocation8 + $0x148] sm:$0xff] %v869_v46 }
 0x1e8   :  { %v781_v47 = vpop.f32.mrf.mxu2  ;;  %v870_v48 = vpop.f32.mrf.mxu3 }
 0x1e9   :  { %v782_v49 = vadd.f32 %v781_v47, %v1490_v9  ;;  %v871_v50 = vadd.f32 %v870_v48, %v1492_v10 }
 0x1eb   :  { %940 = vst [vmem:[#allocation8 + $0x150] sm:$0xff] %v782_v49 }
 0x1ec   :  { %941 = vst [vmem:[#allocation8 + $0x158] sm:$0xff] %v871_v50 }
 0x1f0   :  { %v784_v51 = vpop.f32.mrf.mxu2  ;;  %v873_v52 = vpop.f32.mrf.mxu3 }
 0x1f1   :  { %v785_v53 = vadd.f32 %v784_v51, %v1490_v9  ;;  %v874_v54 = vadd.f32 %v873_v52, %v1492_v10 }
 0x1f3   :  { %942 = vst [vmem:[#allocation8 + $0x160] sm:$0xff] %v785_v53 }
 0x1f4   :  { %943 = vst [vmem:[#allocation8 + $0x168] sm:$0xff] %v874_v54 }
 0x1f8   :  { %v786_v55 = vpop.f32.mrf.mxu2  ;;  %v875_v57 = vpop.f32.mrf.mxu3 }
 0x1f9   :  { %v787_v58 = vadd.f32 %v786_v55, %v1490_v9  ;;  %v876_v59 = vadd.f32 %v875_v57, %v1492_v10 }
 0x1fb   :  { %944 = vst [vmem:[#allocation8 + $0x170] sm:$0xff] %v787_v58 }
 0x1fc   :  { %945 = vst [vmem:[#allocation8 + $0x178] sm:$0xff] %v876_v59 }
 0x200   :  { %v789_v60 = vpop.f32.mrf.mxu2  ;;  %v878_v61 = vpop.f32.mrf.mxu3 }
 0x201   :  { %v790_v62 = vadd.f32 %v789_v60, %v1490_v9  ;;  %v879_v63 = vadd.f32 %v878_v61, %v1492_v10 }
 0x203   :  { %946 = vst [vmem:[#allocation8 + $0x180] sm:$0xff] %v790_v62 }
 0x204   :  { %947 = vst [vmem:[#allocation8 + $0x188] sm:$0xff] %v879_v63 }
 0x208   :  { %v791_v0 = vpop.f32.mrf.mxu2  ;;  %v880_v1 = vpop.f32.mrf.mxu3 }
 0x209   :  { %v792_v2 = vadd.f32 %v791_v0, %v1490_v9  ;;  %v881_v3 = vadd.f32 %v880_v1, %v1492_v10 }
 0x20b   :  { %948 = vst [vmem:[#allocation8 + $0x190] sm:$0xff] %v792_v2 }
 0x20c   :  { %949 = vst [vmem:[#allocation8 + $0x198] sm:$0xff] %v881_v3 }
 0x210   :  { %v794_v4 = vpop.f32.mrf.mxu2  ;;  %v883_v5 = vpop.f32.mrf.mxu3 }
 0x211   :  { %v795_v6 = vadd.f32 %v794_v4, %v1490_v9  ;;  %v884_v7 = vadd.f32 %v883_v5, %v1492_v10 }
 0x213   :  { %950 = vst [vmem:[#allocation8 + $0x1a0] sm:$0xff] %v795_v6 }
 0x214   :  { %951 = vst [vmem:[#allocation8 + $0x1a8] sm:$0xff] %v884_v7 }
 0x218   :  { %v796_v8 = vpop.f32.mrf.mxu2  ;;  %v885_v11 = vpop.f32.mrf.mxu3 }
 0x219   :  { %v797_v12 = vadd.f32 %v796_v8, %v1490_v9  ;;  %v886_v13 = vadd.f32 %v885_v11, %v1492_v10 }
 0x21b   :  { %952 = vst [vmem:[#allocation8 + $0x1b0] sm:$0xff] %v797_v12 }
 0x21c   :  { %953 = vst [vmem:[#allocation8 + $0x1b8] sm:$0xff] %v886_v13 }
 0x220   :  { %v799_v14 = vpop.f32.mrf.mxu2  ;;  %v888_v15 = vpop.f32.mrf.mxu3 }
 0x221   :  { %v800_v16 = vadd.f32 %v799_v14, %v1490_v9  ;;  %v889_v17 = vadd.f32 %v888_v15, %v1492_v10 }
 0x223   :  { %954 = vst [vmem:[#allocation8 + $0x1c0] sm:$0xff] %v800_v16 }
 0x224   :  { %955 = vst [vmem:[#allocation8 + $0x1c8] sm:$0xff] %v889_v17 }
 0x228   :  { %v801_v18 = vpop.f32.mrf.mxu2  ;;  %v890_v19 = vpop.f32.mrf.mxu3 }
 0x229   :  { %v802_v20 = vadd.f32 %v801_v18, %v1490_v9  ;;  %v891_v21 = vadd.f32 %v890_v19, %v1492_v10 }
 0x22b   :  { %956 = vst [vmem:[#allocation8 + $0x1d0] sm:$0xff] %v802_v20 }
 0x22c   :  { %957 = vst [vmem:[#allocation8 + $0x1d8] sm:$0xff] %v891_v21 }
 0x230   :  { %v804_v22 = vpop.f32.mrf.mxu2  ;;  %v893_v56 = vpop.f32.mrf.mxu3 }
 0x231   :  { %v805_v23 = vadd.f32 %v804_v22, %v1490_v9  ;;  %v894_v24 = vadd.f32 %v893_v56, %v1492_v10 }
 0x233   :  { %958 = vst [vmem:[#allocation8 + $0x1e0] sm:$0xff] %v805_v23 }
 0x234   :  { %959 = vst [vmem:[#allocation8 + $0x1e8] sm:$0xff] %v894_v24 }
 0x238   :  { %v806_v25 = vpop.f32.mrf.mxu2  ;;  %v895_v26 = vpop.f32.mrf.mxu3 }
 0x239   :  { %v807_v27 = vadd.f32 %v806_v25, %v1490_v9  ;;  %v896_v28 = vadd.f32 %v895_v26, %v1492_v10 }
 0x23b   :  { %960 = vst [vmem:[#allocation8 + $0x1f0] sm:$0xff] %v807_v27 }
 0x23c   :  { %961 = vst [vmem:[#allocation8 + $0x1f8] sm:$0xff] %v896_v28 }
 0x23d   :  { %974 = dma.vmem_to_hbm [thread:$0]  %s967_s12, 8192, %s969_s15, [#allocation4], %s1423_s16, %s1423_s16, %s1424_s17  }
 0x23e   :  { %1413 = dma.done.wait [#allocation4], 8192  }
 0x23f   :  { %1414 = vsyncadd [#allocation4], 4294959104 }
 0x240   :  { %979 = vsyncpa [#allocation3], 1 }
 0x241   :  { %980 = vsyncpa [#allocation6], 1 }
 0x242   :  { %981 = vsyncpa [#allocation4], 1 }

</bundles_post_ra>
